<compile_context>
chip_gen: v7x
topology: tpu7x:2x2x1
jax: 0.10.0
libtpu: 0.0.40
codegen_flags: <defaults>
</compile_context>

<pallas_src>
import functools
import math

import jax
import jax.numpy as jnp
from jax import lax
from jax.experimental import pallas as pl
from jax.experimental.pallas import tpu as pltpu

# ---------------------------------------------------------------------------
# Tunables (clamped to full extents at toy sizes; multiples of (16, 128) for bf16 otherwise).
# ---------------------------------------------------------------------------
_LINEAR_TM = 256   # row tile for the projections
_LINEAR_TN = 512   # output-column tile
_LINEAR_TK = 512   # contraction tile
_ATTN_TQ = 256     # query-row tile for attention


def _vmem_limit():
    """Generation-aware scoped-VMEM request: ~85% of physical (v5e/v6e 128 MiB, v7x 64 MiB)."""
    try:
        info = pltpu.get_tpu_info()
        phys = getattr(info, "vmem_capacity_bytes", None)
        if phys:
            return max(32 * 1024 * 1024, int(phys * 0.85))
    except Exception:
        pass
    return 32 * 1024 * 1024  # safe on every generation


# ---------------------------------------------------------------------------
# Kernels
# ---------------------------------------------------------------------------
def linear_kernel(x_ref, wt_ref, b_ref, o_ref, acc_ref):
    # x: (tm, tk) bf16 row tile; wt: (tk, tn) bf16; b: (1, tn) f32; acc: (tm, tn) f32.
    k = pl.program_id(2)

    @pl.when(k == 0)
    def _():
        acc_ref[...] = jnp.zeros_like(acc_ref)

    acc_ref[...] += jnp.dot(x_ref[...], wt_ref[...], preferred_element_type=jnp.float32)

    @pl.when(k == pl.num_programs(2) - 1)
    def _():
        o_ref[...] = (acc_ref[...] + b_ref[...]).astype(o_ref.dtype)


def attn_kernel(q_ref, k_ref, v_ref, o_ref, *, num_heads, head_dim):
    # q_ref: (1, tq, E) bf16 query rows (scale already folded into the projection weights)
    # k_ref: (1, S,  E) bf16 keys, resident across q tiles
    # v_ref: (1, S,  E) bf16 values, resident across q tiles
    # o_ref: (1, tq, E)      context, already in merged (seq, heads*head_dim) layout
    q_slab = q_ref[0]                       # (tq, E)
    k_slab = k_ref[0]                       # (S, E)
    v_slab = v_ref[0]                       # (S, E)
    for h in range(num_heads):              # static unroll; fine for modest head counts
        lo = h * head_dim
        hi = lo + head_dim
        q = q_slab[:, lo:hi]                # bf16 (tq, hd)
        k = k_slab[:, lo:hi]                # bf16 (S, hd)
        v = v_slab[:, lo:hi]                # bf16 (S, hd)
        # QK^T as a transposed contraction — bf16 operands, f32 accumulation on the MXU.
        s = lax.dot_general(
            q, k,
            dimension_numbers=(((1,), (1,)), ((), ())),
            preferred_element_type=jnp.float32,
        )                                   # (tq, S) f32
        m = jnp.max(s, axis=-1, keepdims=True)
        p = jnp.exp(s - m)                  # unnormalized probs, f32 (accuracy-first)
        l = jnp.sum(p, axis=-1, keepdims=True)
        ctx = jnp.dot(p.astype(v.dtype), v, preferred_element_type=jnp.float32)   # (tq, hd)
        # Exact normalization of the small (tq, hd) context; per-head store bounds live ranges
        # (lane-dense when head_dim is a multiple of 128).
        o_ref[0, :, lo:hi] = (ctx / l).astype(o_ref.dtype)


# ---------------------------------------------------------------------------
# Pallas wrappers
# ---------------------------------------------------------------------------
def pallas_linear(x, wt, b2, out_dtype=None):
    """y = x @ wt + b.  x: (M, K); wt: (K, N) pre-transposed bf16; b2: (1, N) f32."""
    if x.dtype != jnp.bfloat16:
        x = x.astype(jnp.bfloat16)          # feed the MXU bf16; accumulate in f32
    M, K = x.shape
    N = wt.shape[1]
    out_dtype = out_dtype or x.dtype
    tm = M if M <= _LINEAR_TM else _LINEAR_TM
    tn = N if N <= _LINEAR_TN else _LINEAR_TN
    tk = K if K <= _LINEAR_TK else _LINEAR_TK
    return pl.pallas_call(
        linear_kernel,
        out_shape=jax.ShapeDtypeStruct((M, N), out_dtype),
        grid=(pl.cdiv(M, tm), pl.cdiv(N, tn), pl.cdiv(K, tk)),
        in_specs=[
            pl.BlockSpec((tm, tk), lambda i, j, k: (i, k)),   # streamed row tile
            pl.BlockSpec((tk, tn), lambda i, j, k: (k, j)),   # streamed weight tile
            pl.BlockSpec((1, tn), lambda i, j, k: (0, j)),    # bias tile (f32)
        ],
        out_specs=pl.BlockSpec((tm, tn), lambda i, j, k: (i, j)),
        scratch_shapes=[pltpu.VMEM((tm, tn), jnp.float32)],   # f32 accumulator (P3)
        compiler_params=pltpu.CompilerParams(
            dimension_semantics=("parallel", "parallel", "arbitrary"),
            vmem_limit_bytes=_vmem_limit(),
        ),
    )(x, wt, b2)


def pallas_attention(qkv, num_heads, head_dim):
    """qkv: (B, S, 3E) fused projection in [Q|K|V] layout -> ctx: (B, S, E) merged-head."""
    B, S, threeE = qkv.shape
    E = threeE // 3
    tq = S if S <= _ATTN_TQ else _ATTN_TQ
    kernel = functools.partial(attn_kernel, num_heads=num_heads, head_dim=head_dim)
    # TODO(synk): add a KV grid axis ("arbitrary") with online softmax for long sequences.
    return pl.pallas_call(
        kernel,
        out_shape=jax.ShapeDtypeStruct((B, S, E), qkv.dtype),
        grid=(B, pl.cdiv(S, tq)),
        in_specs=[
            # Same HBM array, three views: last-dim block index selects the Q / K / V slab.
            pl.BlockSpec((1, tq, E), lambda b, qi: (b, qi, 0)),  # Q rows (pipelined)
            pl.BlockSpec((1, S, E), lambda b, qi: (b, 0, 1)),    # K, resident across q tiles
            pl.BlockSpec((1, S, E), lambda b, qi: (b, 0, 2)),    # V, resident across q tiles
        ],
        out_specs=pl.BlockSpec((1, tq, E), lambda b, qi: (b, qi, 0)),
        compiler_params=pltpu.CompilerParams(
            dimension_semantics=("parallel", "parallel"),
            vmem_limit_bytes=_vmem_limit(),
        ),
    )(qkv, qkv, qkv)


# ---------------------------------------------------------------------------
# Parameter prep (done ONCE, outside the forward) + full forward pass
# ---------------------------------------------------------------------------
def prepare_params(params, num_heads):
    """One-time: permute fused QKV weight to [Q|K|V] columns, fold softmax scale into the
    Q columns, pre-transpose, cast weights to bf16 (biases stay f32 for the f32 add)."""
    w_qkv, b_qkv, w_out, b_out = params
    three_e, e = w_qkv.shape
    hd = e // num_heads
    scale = 1.0 / math.sqrt(float(hd))
    # PyTorch layout of output column j: head h = j // (3*hd), part p = (j % (3*hd)) // hd.
    # New layout: column p*E + h*hd + d  <-  old column h*3*hd + p*hd + d.
    perm = jnp.arange(three_e).reshape(num_heads, 3, hd).transpose(1, 0, 2).reshape(-1)
    w_qkv_p = w_qkv[perm, :]
    b_qkv_p = b_qkv[perm]
    # Fold 1/sqrt(hd) into the Q block (first E output columns) of weight AND bias.
    col_scale = jnp.concatenate(
        [jnp.full((e,), scale, w_qkv.dtype), jnp.ones((2 * e,), w_qkv.dtype)]
    )
    w_qkv_p = w_qkv_p * col_scale[:, None]
    b_qkv_p = b_qkv_p * col_scale
    return (
        w_qkv_p.T.astype(jnp.bfloat16),             # (E, 3E) bf16
        b_qkv_p.reshape(1, -1).astype(jnp.float32),  # (1, 3E) f32
        w_out.T.astype(jnp.bfloat16),                # (E, E) bf16
        b_out.reshape(1, -1).astype(jnp.float32),    # (1, E) f32
    )


def mha_forward(x, prepared, num_heads):
    B, S, E = x.shape
    hd = E // num_heads
    wt_qkv, b_qkv2, wt_out, b_out2 = prepared

    # qkv = self.qkv_proj(x)   (output kept bf16 -> half the DMA into attention)
    qkv = pallas_linear(x.reshape(B * S, E), wt_qkv, b_qkv2, out_dtype=jnp.bfloat16)
    qkv = qkv.reshape(B, S, 3 * E)                 # pure reshape, no HBM copy

    # softmax(q k^T / sqrt(hd)) v — scale already folded into the Q projection.
    ctx = pallas_attention(qkv, num_heads, hd)     # (B, S, E), merged-head layout, bf16

    # self.out_proj(output)
    out = pallas_linear(ctx.reshape(B * S, E), wt_out, b_out2, out_dtype=x.dtype)
    return out.reshape(B, S, E)


# Pure-JAX f32 reference (mirrors the PyTorch module exactly), for verification.
def mha_reference(x, params, num_heads):
    B, S, E = x.shape
    hd = E // num_heads
    w_qkv, b_qkv, w_out, b_out = params
    qkv = x @ w_qkv.T + b_qkv
    qkv = qkv.reshape(B, S, num_heads, 3 * hd).transpose(0, 2, 1, 3)
    q, k, v = jnp.split(qkv, 3, axis=-1)
    s = jnp.einsum("bhqd,bhkd->bhqk", q, k) / math.sqrt(float(hd))
    p = jax.nn.softmax(s, axis=-1)
    ctx = jnp.einsum("bhqk,bhkd->bhqd", p, v)
    ctx = ctx.transpose(0, 2, 1, 3).reshape(B, S, E)
    return ctx @ w_out.T + b_out


# ---------------------------------------------------------------------------
# Main
# ---------------------------------------------------------------------------
if __name__ == "__main__":
    # Small but lane-friendly shapes: E = 128 keeps every last-dim block a multiple of 128.
    B, S, E, H = 2, 8, 128, 4

    key = jax.random.PRNGKey(0)
    k1, k2, k3, k4, kx = jax.random.split(key, 5)

    # PyTorch nn.Linear-style uniform init bounds.
    bound = 1.0 / math.sqrt(E)
    w_qkv = jax.random.uniform(k1, (3 * E, E), jnp.float32, -bound, bound)
    b_qkv = jax.random.uniform(k2, (3 * E,), jnp.float32, -bound, bound)
    w_out = jax.random.uniform(k3, (E, E), jnp.float32, -bound, bound)
    b_out = jax.random.uniform(k4, (E,), jnp.float32, -bound, bound)
    params = (w_qkv, b_qkv, w_out, b_out)

    x = jax.random.normal(kx, (B, S, E), jnp.float32)

    prepared = prepare_params(params, H)   # one-time permute/scale/transpose/bf16 cast
    fwd = jax.jit(functools.partial(mha_forward, num_heads=H))

    out = fwd(x, prepared)
    out = jax.block_until_ready(out)

    ref = mha_reference(x, params, H)
    assert out.shape == (B, S, E)
    # Tolerance reflects bf16 MXU operands (f32 accumulation, exact softmax normalization).
    assert jnp.allclose(out, ref, atol=2e-2, rtol=2e-2), "mismatch vs reference"

    print("KERNEL_OK")
</pallas_src>

<mosaic_0001>
module attributes {stable_mosaic.version = 11 : i64} {
  func.func @linear_kernel(%arg0: i32, %arg1: i32, %arg2: i32, %arg3: memref<16x128xbf16, #tpu.memory_space<vmem>>, %arg4: memref<128x384xbf16, #tpu.memory_space<vmem>>, %arg5: memref<1x384xf32, #tpu.memory_space<vmem>>, %arg6: memref<16x384xbf16, #tpu.memory_space<vmem>>, %arg7: memref<16x384xf32, #tpu.memory_space<vmem>>) attributes {dimension_semantics = [#tpu.dimension_semantics<parallel>, #tpu.dimension_semantics<parallel>, #tpu.dimension_semantics<arbitrary>], iteration_bounds = array<i64: 1, 1, 1>, scalar_prefetch = 0 : i64, scratch_operands = 1 : i64, tpu.core_type = #tpu.core_type<tc>, window_params = [{transform_indices = @transform_0, window_bounds = array<i64: 16, 128>}, {transform_indices = @transform_1, window_bounds = array<i64: 128, 384>}, {transform_indices = @transform_2, window_bounds = array<i64: 1, 384>}, {transform_indices = @transform_3, window_bounds = array<i64: 16, 384>}]} {
    %c0_i32 = arith.constant 0 : i32
    %0 = arith.cmpi eq, %arg2, %c0_i32 : i32
    %1 = arith.extui %0 : i1 to i32
    %c0_i32_0 = arith.constant 0 : i32
    %2 = arith.cmpi ne, %1, %c0_i32_0 : i32
    scf.if %2 {
      %cst_10 = arith.constant 0.000000e+00 : f32
      %12 = vector.broadcast %cst_10 : f32 to vector<16x384xf32>
      %c0_11 = arith.constant 0 : index
      %c0_12 = arith.constant 0 : index
      %13 = vector.load %arg7[%c0_11, %c0_12] : memref<16x384xf32, #tpu.memory_space<vmem>>, vector<16x384xf32>
      tpu.vector_store %arg7[%c0_11, %c0_12], %12 {strides = array<i32>} : memref<16x384xf32, #tpu.memory_space<vmem>>, vector<16x384xf32>,
    } else {
    }
    %c0 = arith.constant 0 : index
    %c0_1 = arith.constant 0 : index
    %3 = vector.load %arg7[%c0, %c0_1] : memref<16x384xf32, #tpu.memory_space<vmem>>, vector<16x384xf32>
    %c0_2 = arith.constant 0 : index
    %c0_3 = arith.constant 0 : index
    %4 = vector.load %arg3[%c0_2, %c0_3] : memref<16x128xbf16, #tpu.memory_space<vmem>>, vector<16x128xbf16>
    %c0_4 = arith.constant 0 : index
    %c0_5 = arith.constant 0 : index
    %5 = vector.load %arg4[%c0_4, %c0_5] : memref<128x384xbf16, #tpu.memory_space<vmem>>, vector<128x384xbf16>
    %cst = arith.constant dense<0.000000e+00> : vector<16x384xf32>
    %6 = tpu.matmul %4, %5, %cst {dimension_numbers = #tpu.dot_dimension_numbers<[1], [0], [0], [1], [0, 0, 1, 1], [], []>} : vector<16x128xbf16>, vector<128x384xbf16>, vector<16x384xf32> -> vector<16x384xf32>
    %7 = arith.addf %3, %6 : vector<16x384xf32>
    %c0_6 = arith.constant 0 : index
    %c0_7 = arith.constant 0 : index
    %8 = vector.load %arg7[%c0_6, %c0_7] : memref<16x384xf32, #tpu.memory_space<vmem>>, vector<16x384xf32>
    tpu.vector_store %arg7[%c0_6, %c0_7], %7 {strides = array<i32>} : memref<16x384xf32, #tpu.memory_space<vmem>>, vector<16x384xf32>,
    %c0_i32_8 = arith.constant 0 : i32
    %9 = arith.cmpi eq, %arg2, %c0_i32_8 : i32
    %10 = arith.extui %9 : i1 to i32
    %c0_i32_9 = arith.constant 0 : i32
    %11 = arith.cmpi ne, %10, %c0_i32_9 : i32
    scf.if %11 {
      %c0_10 = arith.constant 0 : index
      %c0_11 = arith.constant 0 : index
      %12 = vector.load %arg7[%c0_10, %c0_11] : memref<16x384xf32, #tpu.memory_space<vmem>>, vector<16x384xf32>
      %c0_12 = arith.constant 0 : index
      %c0_13 = arith.constant 0 : index
      %13 = vector.load %arg5[%c0_12, %c0_13] : memref<1x384xf32, #tpu.memory_space<vmem>>, vector<1x384xf32>
      %14 = vector.broadcast %13 : vector<1x384xf32> to vector<16x384xf32>
      %15 = arith.addf %12, %14 : vector<16x384xf32>
      %16 = arith.truncf %15 : vector<16x384xf32> to vector<16x384xbf16>
      %c0_14 = arith.constant 0 : index
      %c0_15 = arith.constant 0 : index
      %17 = vector.load %arg6[%c0_14, %c0_15] : memref<16x384xbf16, #tpu.memory_space<vmem>>, vector<16x384xbf16>
      tpu.vector_store %arg6[%c0_14, %c0_15], %16 {strides = array<i32>} : memref<16x384xbf16, #tpu.memory_space<vmem>>, vector<16x384xbf16>,
    } else {
    }
    return
  }
  func.func @transform_0(%arg0: i32, %arg1: i32, %arg2: i32) -> (i32, i32) {
    %c0_i32 = arith.constant 0 : i32
    return %arg0, %arg2 : i32, i32
  }
  func.func @transform_1(%arg0: i32, %arg1: i32, %arg2: i32) -> (i32, i32) {
    %c0_i32 = arith.constant 0 : i32
    return %arg2, %arg1 : i32, i32
  }
  func.func @transform_2(%arg0: i32, %arg1: i32, %arg2: i32) -> (i32, i32) {
    %c0_i32 = arith.constant 0 : i32
    %c0_i32_0 = arith.constant 0 : i32
    return %c0_i32, %arg1 : i32, i32
  }
  func.func @transform_3(%arg0: i32, %arg1: i32, %arg2: i32) -> (i32, i32) {
    %c0_i32 = arith.constant 0 : i32
    return %arg0, %arg1 : i32, i32
  }
}

module attributes {stable_mosaic.version = 11 : i64} {
  func.func @attn_kernel(%arg0: i32, %arg1: i32, %arg2: memref<1x8x128xbf16, #tpu.memory_space<vmem>>, %arg3: memref<1x8x128xbf16, #tpu.memory_space<vmem>>, %arg4: memref<1x8x128xbf16, #tpu.memory_space<vmem>>, %arg5: memref<1x8x128xbf16, #tpu.memory_space<vmem>>) attributes {dimension_semantics = [#tpu.dimension_semantics<parallel>, #tpu.dimension_semantics<parallel>], iteration_bounds = array<i64: 2, 1>, scalar_prefetch = 0 : i64, scratch_operands = 0 : i64, tpu.core_type = #tpu.core_type<tc>, window_params = [{transform_indices = @transform_0, window_bounds = array<i64: 1, 8, 128>}, {transform_indices = @transform_1, window_bounds = array<i64: 1, 8, 128>}, {transform_indices = @transform_2, window_bounds = array<i64: 1, 8, 128>}, {transform_indices = @transform_3, window_bounds = array<i64: 1, 8, 128>}]} {
    %c0 = arith.constant 0 : index
    %c0_0 = arith.constant 0 : index
    %c0_1 = arith.constant 0 : index
    %0 = vector.load %arg2[%c0, %c0_0, %c0_1] : memref<1x8x128xbf16, #tpu.memory_space<vmem>>, vector<1x8x128xbf16>
    %1 = vector.shape_cast %0 : vector<1x8x128xbf16> to vector<8x128xbf16>
    %c0_2 = arith.constant 0 : index
    %c0_3 = arith.constant 0 : index
    %c0_4 = arith.constant 0 : index
    %2 = vector.load %arg3[%c0_2, %c0_3, %c0_4] : memref<1x8x128xbf16, #tpu.memory_space<vmem>>, vector<1x8x128xbf16>
    %3 = vector.shape_cast %2 : vector<1x8x128xbf16> to vector<8x128xbf16>
    %c0_5 = arith.constant 0 : index
    %c0_6 = arith.constant 0 : index
    %c0_7 = arith.constant 0 : index
    %4 = vector.load %arg4[%c0_5, %c0_6, %c0_7] : memref<1x8x128xbf16, #tpu.memory_space<vmem>>, vector<1x8x128xbf16>
    %5 = vector.shape_cast %4 : vector<1x8x128xbf16> to vector<8x128xbf16>
    %6 = vector.extract_strided_slice %1 {offsets = [0, 0], sizes = [8, 32], strides = [1, 1]} : vector<8x128xbf16> to vector<8x32xbf16>
    %7 = vector.extract_strided_slice %3 {offsets = [0, 0], sizes = [8, 32], strides = [1, 1]} : vector<8x128xbf16> to vector<8x32xbf16>
    %8 = vector.extract_strided_slice %5 {offsets = [0, 0], sizes = [8, 32], strides = [1, 1]} : vector<8x128xbf16> to vector<8x32xbf16>
    %cst = arith.constant dense<0.000000e+00> : vector<8x8xf32>
    %9 = tpu.matmul %6, %7, %cst {dimension_numbers = #tpu.dot_dimension_numbers<[1], [1], [0], [0], [0, 0, 1, 0], [], []>} : vector<8x32xbf16>, vector<8x32xbf16>, vector<8x8xf32> -> vector<8x8xf32>
    %cst_8 = arith.constant dense<0xFF800000> : vector<8xf32>
    %10 = vector.multi_reduction <maximumf>, %9, %cst_8 [1] : vector<8x8xf32> to vector<8xf32>
    %11 = vector.shape_cast %10 : vector<8xf32> to vector<8x1xf32>
    %12 = vector.broadcast %11 : vector<8x1xf32> to vector<8x8xf32>
    %13 = arith.subf %9, %12 : vector<8x8xf32>
    %14 = math.exp %13 : vector<8x8xf32>
    %cst_9 = arith.constant dense<0.000000e+00> : vector<8xf32>
    %15 = vector.multi_reduction <add>, %14, %cst_9 [1] : vector<8x8xf32> to vector<8xf32>
    %16 = vector.shape_cast %15 : vector<8xf32> to vector<8x1xf32>
    %17 = arith.truncf %14 : vector<8x8xf32> to vector<8x8xbf16>
    %cst_10 = arith.constant dense<0.000000e+00> : vector<8x32xf32>
    %18 = tpu.matmul %17, %8, %cst_10 {dimension_numbers = #tpu.dot_dimension_numbers<[1], [0], [0], [1], [0, 0, 1, 1], [], []>} : vector<8x8xbf16>, vector<8x32xbf16>, vector<8x32xf32> -> vector<8x32xf32>
    %19 = vector.broadcast %16 : vector<8x1xf32> to vector<8x32xf32>
    %20 = arith.divf %18, %19 : vector<8x32xf32>
    %21 = arith.truncf %20 : vector<8x32xf32> to vector<8x32xbf16>
    %c0_11 = arith.constant 0 : index
    %c0_12 = arith.constant 0 : index
    %c0_13 = arith.constant 0 : index
    %22 = vector.load %arg5[%c0_11, %c0_12, %c0_13] : memref<1x8x128xbf16, #tpu.memory_space<vmem>>, vector<1x8x32xbf16>
    %23 = vector.shape_cast %22 : vector<1x8x32xbf16> to vector<8x32xbf16>
    %24 = vector.shape_cast %21 : vector<8x32xbf16> to vector<1x8x32xbf16>
    tpu.vector_store %arg5[%c0_11, %c0_12, %c0_13], %24 {strides = array<i32>} : memref<1x8x128xbf16, #tpu.memory_space<vmem>>, vector<1x8x32xbf16>,
    %25 = vector.extract_strided_slice %1 {offsets = [0, 32], sizes = [8, 32], strides = [1, 1]} : vector<8x128xbf16> to vector<8x32xbf16>
    %26 = vector.extract_strided_slice %3 {offsets = [0, 32], sizes = [8, 32], strides = [1, 1]} : vector<8x128xbf16> to vector<8x32xbf16>
    %27 = vector.extract_strided_slice %5 {offsets = [0, 32], sizes = [8, 32], strides = [1, 1]} : vector<8x128xbf16> to vector<8x32xbf16>
    %cst_14 = arith.constant dense<0.000000e+00> : vector<8x8xf32>
    %28 = tpu.matmul %25, %26, %cst_14 {dimension_numbers = #tpu.dot_dimension_numbers<[1], [1], [0], [0], [0, 0, 1, 0], [], []>} : vector<8x32xbf16>, vector<8x32xbf16>, vector<8x8xf32> -> vector<8x8xf32>
    %cst_15 = arith.constant dense<0xFF800000> : vector<8xf32>
    %29 = vector.multi_reduction <maximumf>, %28, %cst_15 [1] : vector<8x8xf32> to vector<8xf32>
    %30 = vector.shape_cast %29 : vector<8xf32> to vector<8x1xf32>
    %31 = vector.broadcast %30 : vector<8x1xf32> to vector<8x8xf32>
    %32 = arith.subf %28, %31 : vector<8x8xf32>
    %33 = math.exp %32 : vector<8x8xf32>
    %cst_16 = arith.constant dense<0.000000e+00> : vector<8xf32>
    %34 = vector.multi_reduction <add>, %33, %cst_16 [1] : vector<8x8xf32> to vector<8xf32>
    %35 = vector.shape_cast %34 : vector<8xf32> to vector<8x1xf32>
    %36 = arith.truncf %33 : vector<8x8xf32> to vector<8x8xbf16>
    %cst_17 = arith.constant dense<0.000000e+00> : vector<8x32xf32>
    %37 = tpu.matmul %36, %27, %cst_17 {dimension_numbers = #tpu.dot_dimension_numbers<[1], [0], [0], [1], [0, 0, 1, 1], [], []>} : vector<8x8xbf16>, vector<8x32xbf16>, vector<8x32xf32> -> vector<8x32xf32>
    %38 = vector.broadcast %35 : vector<8x1xf32> to vector<8x32xf32>
    %39 = arith.divf %37, %38 : vector<8x32xf32>
    %40 = arith.truncf %39 : vector<8x32xf32> to vector<8x32xbf16>
    %c0_18 = arith.constant 0 : index
    %c0_19 = arith.constant 0 : index
    %c32 = arith.constant 32 : index
    %41 = vector.load %arg5[%c0_18, %c0_19, %c32] : memref<1x8x128xbf16, #tpu.memory_space<vmem>>, vector<1x8x32xbf16>
    %42 = vector.shape_cast %41 : vector<1x8x32xbf16> to vector<8x32xbf16>
    %43 = vector.shape_cast %40 : vector<8x32xbf16> to vector<1x8x32xbf16>
    tpu.vector_store %arg5[%c0_18, %c0_19, %c32], %43 {strides = array<i32>} : memref<1x8x128xbf16, #tpu.memory_space<vmem>>, vector<1x8x32xbf16>,
    %44 = vector.extract_strided_slice %1 {offsets = [0, 64], sizes = [8, 32], strides = [1, 1]} : vector<8x128xbf16> to vector<8x32xbf16>
    %45 = vector.extract_strided_slice %3 {offsets = [0, 64], sizes = [8, 32], strides = [1, 1]} : vector<8x128xbf16> to vector<8x32xbf16>
    %46 = vector.extract_strided_slice %5 {offsets = [0, 64], sizes = [8, 32], strides = [1, 1]} : vector<8x128xbf16> to vector<8x32xbf16>
    %cst_20 = arith.constant dense<0.000000e+00> : vector<8x8xf32>
    %47 = tpu.matmul %44, %45, %cst_20 {dimension_numbers = #tpu.dot_dimension_numbers<[1], [1], [0], [0], [0, 0, 1, 0], [], []>} : vector<8x32xbf16>, vector<8x32xbf16>, vector<8x8xf32> -> vector<8x8xf32>
    %cst_21 = arith.constant dense<0xFF800000> : vector<8xf32>
    %48 = vector.multi_reduction <maximumf>, %47, %cst_21 [1] : vector<8x8xf32> to vector<8xf32>
    %49 = vector.shape_cast %48 : vector<8xf32> to vector<8x1xf32>
    %50 = vector.broadcast %49 : vector<8x1xf32> to vector<8x8xf32>
    %51 = arith.subf %47, %50 : vector<8x8xf32>
    %52 = math.exp %51 : vector<8x8xf32>
    %cst_22 = arith.constant dense<0.000000e+00> : vector<8xf32>
    %53 = vector.multi_reduction <add>, %52, %cst_22 [1] : vector<8x8xf32> to vector<8xf32>
    %54 = vector.shape_cast %53 : vector<8xf32> to vector<8x1xf32>
    %55 = arith.truncf %52 : vector<8x8xf32> to vector<8x8xbf16>
    %cst_23 = arith.constant dense<0.000000e+00> : vector<8x32xf32>
    %56 = tpu.matmul %55, %46, %cst_23 {dimension_numbers = #tpu.dot_dimension_numbers<[1], [0], [0], [1], [0, 0, 1, 1], [], []>} : vector<8x8xbf16>, vector<8x32xbf16>, vector<8x32xf32> -> vector<8x32xf32>
    %57 = vector.broadcast %54 : vector<8x1xf32> to vector<8x32xf32>
    %58 = arith.divf %56, %57 : vector<8x32xf32>
    %59 = arith.truncf %58 : vector<8x32xf32> to vector<8x32xbf16>
    %c0_24 = arith.constant 0 : index
    %c0_25 = arith.constant 0 : index
    %c64 = arith.constant 64 : index
    %60 = vector.load %arg5[%c0_24, %c0_25, %c64] : memref<1x8x128xbf16, #tpu.memory_space<vmem>>, vector<1x8x32xbf16>
    %61 = vector.shape_cast %60 : vector<1x8x32xbf16> to vector<8x32xbf16>
    %62 = vector.shape_cast %59 : vector<8x32xbf16> to vector<1x8x32xbf16>
    tpu.vector_store %arg5[%c0_24, %c0_25, %c64], %62 {strides = array<i32>} : memref<1x8x128xbf16, #tpu.memory_space<vmem>>, vector<1x8x32xbf16>,
    %63 = vector.extract_strided_slice %1 {offsets = [0, 96], sizes = [8, 32], strides = [1, 1]} : vector<8x128xbf16> to vector<8x32xbf16>
    %64 = vector.extract_strided_slice %3 {offsets = [0, 96], sizes = [8, 32], strides = [1, 1]} : vector<8x128xbf16> to vector<8x32xbf16>
    %65 = vector.extract_strided_slice %5 {offsets = [0, 96], sizes = [8, 32], strides = [1, 1]} : vector<8x128xbf16> to vector<8x32xbf16>
    %cst_26 = arith.constant dense<0.000000e+00> : vector<8x8xf32>
    %66 = tpu.matmul %63, %64, %cst_26 {dimension_numbers = #tpu.dot_dimension_numbers<[1], [1], [0], [0], [0, 0, 1, 0], [], []>} : vector<8x32xbf16>, vector<8x32xbf16>, vector<8x8xf32> -> vector<8x8xf32>
    %cst_27 = arith.constant dense<0xFF800000> : vector<8xf32>
    %67 = vector.multi_reduction <maximumf>, %66, %cst_27 [1] : vector<8x8xf32> to vector<8xf32>
    %68 = vector.shape_cast %67 : vector<8xf32> to vector<8x1xf32>
    %69 = vector.broadcast %68 : vector<8x1xf32> to vector<8x8xf32>
    %70 = arith.subf %66, %69 : vector<8x8xf32>
    %71 = math.exp %70 : vector<8x8xf32>
    %cst_28 = arith.constant dense<0.000000e+00> : vector<8xf32>
    %72 = vector.multi_reduction <add>, %71, %cst_28 [1] : vector<8x8xf32> to vector<8xf32>
    %73 = vector.shape_cast %72 : vector<8xf32> to vector<8x1xf32>
    %74 = arith.truncf %71 : vector<8x8xf32> to vector<8x8xbf16>
    %cst_29 = arith.constant dense<0.000000e+00> : vector<8x32xf32>
    %75 = tpu.matmul %74, %65, %cst_29 {dimension_numbers = #tpu.dot_dimension_numbers<[1], [0], [0], [1], [0, 0, 1, 1], [], []>} : vector<8x8xbf16>, vector<8x32xbf16>, vector<8x32xf32> -> vector<8x32xf32>
    %76 = vector.broadcast %73 : vector<8x1xf32> to vector<8x32xf32>
    %77 = arith.divf %75, %76 : vector<8x32xf32>
    %78 = arith.truncf %77 : vector<8x32xf32> to vector<8x32xbf16>
    %c0_30 = arith.constant 0 : index
    %c0_31 = arith.constant 0 : index
    %c96 = arith.constant 96 : index
    %79 = vector.load %arg5[%c0_30, %c0_31, %c96] : memref<1x8x128xbf16, #tpu.memory_space<vmem>>, vector<1x8x32xbf16>
    %80 = vector.shape_cast %79 : vector<1x8x32xbf16> to vector<8x32xbf16>
    %81 = vector.shape_cast %78 : vector<8x32xbf16> to vector<1x8x32xbf16>
    tpu.vector_store %arg5[%c0_30, %c0_31, %c96], %81 {strides = array<i32>} : memref<1x8x128xbf16, #tpu.memory_space<vmem>>, vector<1x8x32xbf16>,
    return
  }
  func.func @transform_0(%arg0: i32, %arg1: i32) -> (i32, i32, i32) {
    %c0_i32 = arith.constant 0 : i32
    %c0_i32_0 = arith.constant 0 : i32
    return %arg0, %arg1, %c0_i32 : i32, i32, i32
  }
  func.func @transform_1(%arg0: i32, %arg1: i32) -> (i32, i32, i32) {
    %c0_i32 = arith.constant 0 : i32
    %c1_i32 = arith.constant 1 : i32
    %c0_i32_0 = arith.constant 0 : i32
    return %arg0, %c0_i32, %c1_i32 : i32, i32, i32
  }
  func.func @transform_2(%arg0: i32, %arg1: i32) -> (i32, i32, i32) {
    %c0_i32 = arith.constant 0 : i32
    %c2_i32 = arith.constant 2 : i32
    %c0_i32_0 = arith.constant 0 : i32
    return %arg0, %c0_i32, %c2_i32 : i32, i32, i32
  }
  func.func @transform_3(%arg0: i32, %arg1: i32) -> (i32, i32, i32) {
    %c0_i32 = arith.constant 0 : i32
    %c0_i32_0 = arith.constant 0 : i32
    return %arg0, %arg1, %c0_i32 : i32, i32, i32
  }
}

module attributes {stable_mosaic.version = 11 : i64} {
  func.func @linear_kernel(%arg0: i32, %arg1: i32, %arg2: i32, %arg3: memref<16x128xbf16, #tpu.memory_space<vmem>>, %arg4: memref<128x128xbf16, #tpu.memory_space<vmem>>, %arg5: memref<1x128xf32, #tpu.memory_space<vmem>>, %arg6: memref<16x128xf32, #tpu.memory_space<vmem>>, %arg7: memref<16x128xf32, #tpu.memory_space<vmem>>) attributes {dimension_semantics = [#tpu.dimension_semantics<parallel>, #tpu.dimension_semantics<parallel>, #tpu.dimension_semantics<arbitrary>], iteration_bounds = array<i64: 1, 1, 1>, scalar_prefetch = 0 : i64, scratch_operands = 1 : i64, tpu.core_type = #tpu.core_type<tc>, window_params = [{transform_indices = @transform_0, window_bounds = array<i64: 16, 128>}, {transform_indices = @transform_1, window_bounds = array<i64: 128, 128>}, {transform_indices = @transform_2, window_bounds = array<i64: 1, 128>}, {transform_indices = @transform_3, window_bounds = array<i64: 16, 128>}]} {
    %c0_i32 = arith.constant 0 : i32
    %0 = arith.cmpi eq, %arg2, %c0_i32 : i32
    %1 = arith.extui %0 : i1 to i32
    %c0_i32_0 = arith.constant 0 : i32
    %2 = arith.cmpi ne, %1, %c0_i32_0 : i32
    scf.if %2 {
      %cst_10 = arith.constant 0.000000e+00 : f32
      %12 = vector.broadcast %cst_10 : f32 to vector<16x128xf32>
      %c0_11 = arith.constant 0 : index
      %c0_12 = arith.constant 0 : index
      %13 = vector.load %arg7[%c0_11, %c0_12] : memref<16x128xf32, #tpu.memory_space<vmem>>, vector<16x128xf32>
      tpu.vector_store %arg7[%c0_11, %c0_12], %12 {strides = array<i32>} : memref<16x128xf32, #tpu.memory_space<vmem>>, vector<16x128xf32>,
    } else {
    }
    %c0 = arith.constant 0 : index
    %c0_1 = arith.constant 0 : index
    %3 = vector.load %arg7[%c0, %c0_1] : memref<16x128xf32, #tpu.memory_space<vmem>>, vector<16x128xf32>
    %c0_2 = arith.constant 0 : index
    %c0_3 = arith.constant 0 : index
    %4 = vector.load %arg3[%c0_2, %c0_3] : memref<16x128xbf16, #tpu.memory_space<vmem>>, vector<16x128xbf16>
    %c0_4 = arith.constant 0 : index
    %c0_5 = arith.constant 0 : index
    %5 = vector.load %arg4[%c0_4, %c0_5] : memref<128x128xbf16, #tpu.memory_space<vmem>>, vector<128x128xbf16>
    %cst = arith.constant dense<0.000000e+00> : vector<16x128xf32>
    %6 = tpu.matmul %4, %5, %cst {dimension_numbers = #tpu.dot_dimension_numbers<[1], [0], [0], [1], [0, 0, 1, 1], [], []>} : vector<16x128xbf16>, vector<128x128xbf16>, vector<16x128xf32> -> vector<16x128xf32>
    %7 = arith.addf %3, %6 : vector<16x128xf32>
    %c0_6 = arith.constant 0 : index
    %c0_7 = arith.constant 0 : index
    %8 = vector.load %arg7[%c0_6, %c0_7] : memref<16x128xf32, #tpu.memory_space<vmem>>, vector<16x128xf32>
    tpu.vector_store %arg7[%c0_6, %c0_7], %7 {strides = array<i32>} : memref<16x128xf32, #tpu.memory_space<vmem>>, vector<16x128xf32>,
    %c0_i32_8 = arith.constant 0 : i32
    %9 = arith.cmpi eq, %arg2, %c0_i32_8 : i32
    %10 = arith.extui %9 : i1 to i32
    %c0_i32_9 = arith.constant 0 : i32
    %11 = arith.cmpi ne, %10, %c0_i32_9 : i32
    scf.if %11 {
      %c0_10 = arith.constant 0 : index
      %c0_11 = arith.constant 0 : index
      %12 = vector.load %arg7[%c0_10, %c0_11] : memref<16x128xf32, #tpu.memory_space<vmem>>, vector<16x128xf32>
      %c0_12 = arith.constant 0 : index
      %c0_13 = arith.constant 0 : index
      %13 = vector.load %arg5[%c0_12, %c0_13] : memref<1x128xf32, #tpu.memory_space<vmem>>, vector<1x128xf32>
      %14 = vector.broadcast %13 : vector<1x128xf32> to vector<16x128xf32>
      %15 = arith.addf %12, %14 : vector<16x128xf32>
      %c0_14 = arith.constant 0 : index
      %c0_15 = arith.constant 0 : index
      %16 = vector.load %arg6[%c0_14, %c0_15] : memref<16x128xf32, #tpu.memory_space<vmem>>, vector<16x128xf32>
      tpu.vector_store %arg6[%c0_14, %c0_15], %15 {strides = array<i32>} : memref<16x128xf32, #tpu.memory_space<vmem>>, vector<16x128xf32>,
    } else {
    }
    return
  }
  func.func @transform_0(%arg0: i32, %arg1: i32, %arg2: i32) -> (i32, i32) {
    %c0_i32 = arith.constant 0 : i32
    return %arg0, %arg2 : i32, i32
  }
  func.func @transform_1(%arg0: i32, %arg1: i32, %arg2: i32) -> (i32, i32) {
    %c0_i32 = arith.constant 0 : i32
    return %arg2, %arg1 : i32, i32
  }
  func.func @transform_2(%arg0: i32, %arg1: i32, %arg2: i32) -> (i32, i32) {
    %c0_i32 = arith.constant 0 : i32
    %c0_i32_0 = arith.constant 0 : i32
    return %c0_i32, %arg1 : i32, i32
  }
  func.func @transform_3(%arg0: i32, %arg1: i32, %arg2: i32) -> (i32, i32) {
    %c0_i32 = arith.constant 0 : i32
    return %arg0, %arg1 : i32, i32
  }
}

</mosaic_0001>

<bundles_post_ra>
// kernel: mha_forward.5
= control target key start
LH: loop header
LB: loop body
LE: loop exit
PB: predicated region body
PF: predicated region fallthrough
CT: control target
= control target key end

     0   :  { %v250_v1 = vmov 0.0   ;;  %vm251_vm0 = vmmov 0   ;;  %s317_s0 = inlined_call_operand.vmem [shape: bf16[16,128], index: 0, kind: input, shape index: {}]   ;;  %s318_s1 = inlined_call_operand.vmem [shape: bf16[128,128], index: 1, kind: input, shape index: {}]   ;;  %s319_s2 = inlined_call_operand.vmem [shape: f32[1,128], index: 2, kind: input, shape index: {}]   ;;  %s320_s3 = inlined_call_operand.hbm [shape: f32[16,128], index: 3, kind: output, shape index: {}]  }
   0x1   :  { %v217_v0 = vld [vmem:[%s318_s1] sm:$0xff]   ;;  %192 = vmatprep.subr.bf16.mxu0 %v250_v1  ;;  %v218_v2 = vld [vmem:[%s318_s1 + $0x8] sm:$0xff]   ;;  %208 = vmatprep.mubr.msk.bf16.mxu0 %vm251_vm0, %v250_v1  ;;  %v219_v3 = vld [vmem:[%s318_s1 + $0x10] sm:$0xff]  }
   0x2   :  { %193 = vmatpush3.bf16.msra.mxu0 %v217_v0 }
   0x3   :  { %194 = vmatprep.subr.bf16.mxu0 %v250_v1 }
   0x6   :  { %195 = vmatpush3.bf16.msra.mxu0 %v218_v2 }
   0x7   :  { %196 = vmatprep.subr.bf16.mxu0 %v250_v1 }
   0x8   :  { %8 = vsyncpa [#allocation4], 0  ;;  %v220_v4 = vld [vmem:[%s318_s1 + $0x18] sm:$0xff]   ;;  %v221_v5 = vld [vmem:[%s318_s1 + $0x20] sm:$0xff]   ;;  %s252_s5 = smov [#allocation3]  }
   0x9   :  { %v222_v6 = vld [vmem:[%s318_s1 + $0x28] sm:$0xff]   ;;  %v223_v7 = vld [vmem:[%s318_s1 + $0x30] sm:$0xff]   ;;  %v224_v8 = vld [vmem:[%s318_s1 + $0x38] sm:$0xff]   ;;  %s162_s6 = sshll.u32 %s252_s5, 4  ;;  %s163_s6 = int_to_ptr.vmem [resolvable:$true] %s162_s6 }
   0xa   :  { %197 = vmatpush3.bf16.msra.mxu0 %v219_v3  ;;  %v225_v9 = vld [vmem:[%s317_s0] sm:$0xff]   ;;  %s226_s1 = scalar_lea.vmem %s163_s6, 256  ;;  %p231_p1 = scmp.lt.s32.totalorder %s163_s6, %s163_s6 }
   0xb   :  { %198 = vmatprep.subr.bf16.mxu0 %v250_v1  ;;  %v182_v10 = vld [vmem:[%s319_s2] ss:$0 sm:$0xff]  ;;  %p227_p0 = scmp.ne.s32.totalorder %s163_s6, %s226_s1  ;;  %p232_p2 = scmp.lt.s32.totalorder %s226_s1, %s226_s1 }
   0xd   :  { %p233_p3 = por %p232_p2, %p231_p1 }
   0xe   :  { %199 = vmatpush3.bf16.msra.mxu0 %v220_v4 }
   0xf   :  { %200 = vmatprep.subr.bf16.mxu0 %v250_v1  ;;  %p234_p4 = pnand %p233_p3, %p227_p0 }
  0x12   :  { %201 = vmatpush3.bf16.msra.mxu0 %v221_v5 }
  0x13   :  { %202 = vmatprep.subr.bf16.mxu0 %v250_v1 }
  0x16   :  { %203 = vmatpush3.bf16.msra.mxu0 %v222_v6 }
  0x17   :  { %204 = vmatprep.subr.bf16.mxu0 %v250_v1 }
  0x1a   :  { %205 = vmatpush3.bf16.msra.mxu0 %v223_v7 }
  0x1b   :  { %206 = vmatprep.subr.bf16.mxu0 %v250_v1 }
  0x1e   :  { %207 = vmatpush3.bf16.msra.mxu0 %v224_v8 }
  0x21   :  { %209 = vmatmul.mubr.bf16.vlgmr.msra.gmra.mrb[0].mxu0 %v225_v9 }
  0xf4   :  { %v130_v11 = vpop.f32.mrb[0].mxu0 }
  0xf5   :  { %v153_v12 = vadd.f32 %v182_v10, %v130_v11  ;;  %v210_v13 = vpop.f32.mrb[1].mxu0 }
  0xf6   :  { %v133_v14 = vpop.f32.mrb[2].mxu0 }
  0xf7   :  { %155 = vst [vmem:[#allocation3] sm:$0xff] %v153_v12  ;;  %v154_v15 = vadd.f32 %v182_v10, %v133_v14  ;;  %v211_v16 = vpop.f32.mrb[3].mxu0 }
  0xf9   :  { %156 = vst [vmem:[#allocation3 + $0x8] sm:$0xff] %v154_v15 }
  0xfa   :  { %237 = shalt.err (!%p234_p4)
}
  0xfb   :  { %s238_s7 = scalar_lea.hbm %s320_s3, 256 }
  0xfc   :  { %p239_p5 = scmp.ne.s32.totalorder %s320_s3, %s238_s7  ;;  %p242_p6 = scmp.lt.u32.totalorder %s238_s7, %s320_s3 }
  0xfe   :  { %p244_p7 = pnand %p242_p6, %p239_p5 }
 0x100   :  { %247 = shalt.err (!%p244_p7)
}
 0x101   :  { %s253_s12 = smov 128   ;;  %s254_s13 = smov 8  }
 0x102   :  { %168 = dma.vmem_to_hbm [thread:$0]  %s163_s6, 256, %s320_s3, [#allocation4], %s253_s12, %s253_s12, %s254_s13  }
 0x103   :  { %248 = dma.done.wait [#allocation4], 256  }
 0x104   :  { %249 = vsyncadd [#allocation4], 4294967040 }
 0x105   :  { %172 = vsyncpa [#allocation4], 1 }

// kernel: mha_forward.3
= control target key start
LH: loop header
LB: loop body
LE: loop exit
PB: predicated region body
PF: predicated region fallthrough
CT: control target
= control target key end

     0   :  { %8 = vsyncpa [#allocation4], 0  ;;  %s495_s12 = smov [#allocation3]   ;;  %s551_s0 = inlined_call_operand.vmem [shape: bf16[16,128], index: 0, kind: input, shape index: {}]   ;;  %s552_s1 = inlined_call_operand.hbm [shape: bf16[128,384], index: 1, kind: input, shape index: {}]   ;;  %s553_s2 = inlined_call_operand.vmem [shape: f32[1,384], index: 2, kind: input, shape index: {}]   ;;  %s554_s3 = inlined_call_operand.vmem [shape: bf16[16,384], index: 3, kind: output, shape index: {}]  }
   0x1   :  { %s16_s13 = sshll.u32 %s495_s12, 4  ;;  %s471_s16 = scalar_lea.hbm %s552_s1, 3072  ;;  %s17_s13 = int_to_ptr.vmem [resolvable:$true] %s16_s13 }
   0x2   :  { %p472_p0 = scmp.ne.s32.totalorder %s552_s1, %s471_s16  ;;  %p475_p1 = scmp.lt.u32.totalorder %s471_s16, %s552_s1 }
   0x4   :  { %p477_p2 = pnand %p475_p1, %p472_p0 }
   0x6   :  { %480 = shalt.err (!%p477_p2)
}
   0x7   :  { %s481_s21 = scalar_lea.vmem %s17_s13, 3072  ;;  %p486_p4 = scmp.lt.s32.totalorder %s17_s13, %s17_s13 }
   0x8   :  { %p482_p3 = scmp.ne.s32.totalorder %s17_s13, %s481_s21  ;;  %p487_p5 = scmp.lt.s32.totalorder %s481_s21, %s481_s21 }
   0xa   :  { %p488_p6 = por %p487_p5, %p486_p4 }
   0xc   :  { %p489_p7 = pnand %p488_p6, %p482_p3 }
   0xe   :  { %492 = shalt.err (!%p489_p7)
}
   0xf   :  { %s496_s22 = smov 192   ;;  %s497_s23 = smov 12  }
  0x10   :  { %22 = dma.hbm_to_vmem [thread:$0]  %s552_s1, 3072, %s17_s13, [#allocation4], %s496_s22, %s496_s22, %s497_s23  }
  0x11   :  { %493 = dma.done.wait [#allocation4], 3072  }
  0x12   :  { %494 = vsyncadd [#allocation4], 4294964224  ;;  %v498_v0 = vmov 0.0   ;;  %vm499_vm0 = vmmov 0   ;;  %v500_v1 = vmov 0   ;;  %v470_v26 = vld [vmem:[%s551_s0] sm:$0xff]   ;;  %v320_v27 = vlaneseq }
  0x13   :  { %412 = vmatprep.subr.bf16.mxu1 %v498_v0  ;;  %428 = vmatprep.mubr.msk.bf16.mxu1 %vm499_vm0, %v498_v0  ;;  %v438_v2 = vld [vmem:[#allocation3 + $0x4] ss:$12 sps:$4 sm:$0xff]   ;;  %v440_v3 = vld [vmem:[#allocation3 + $0x8] ss:$12 sps:$4 sm:$0xff]   ;;  %v441_v4 = vld [vmem:[#allocation3] ss:$12 sps:$4 sm:$0xff]  }
  0x14   :  { %245 = vmatprep.mubr.bf16.mxu0 %v500_v1  ;;  %213 = vmatprep.subr.bf16.mxu0 %v438_v2  ;;  %v442_v5 = vld [vmem:[#allocation3 + $0x1c] ss:$12 sps:$4 sm:$0xff]   ;;  %v444_v6 = vld [vmem:[#allocation3 + $0x20] ss:$12 sps:$4 sm:$0xff]   ;;  %v445_v7 = vld [vmem:[#allocation3 + $0x18] ss:$12 sps:$4 sm:$0xff]  }
  0x15   :  { %413 = vmatpush3.bf16.msra.mxu1 %v440_v3  ;;  %214 = vmatpush1.bf16.msra.mxu0 %v441_v4  ;;  %v446_v8 = vld [vmem:[#allocation3 + $0x34] ss:$12 sps:$4 sm:$0xff]   ;;  %v448_v9 = vld [vmem:[#allocation3 + $0x38] ss:$12 sps:$4 sm:$0xff]   ;;  %v449_v10 = vld [vmem:[#allocation3 + $0x30] ss:$12 sps:$4 sm:$0xff]  }
  0x16   :  { %414 = vmatprep.subr.bf16.mxu1 %v498_v0  ;;  %215 = vmatprep.subr.bf16.mxu0 %v442_v5  ;;  %v450_v11 = vld [vmem:[#allocation3 + $0x4c] ss:$12 sps:$4 sm:$0xff]   ;;  %v452_v12 = vld [vmem:[#allocation3 + $0x50] ss:$12 sps:$4 sm:$0xff]   ;;  %v453_v13 = vld [vmem:[#allocation3 + $0x48] ss:$12 sps:$4 sm:$0xff]  }
  0x17   :  { %v454_v14 = vld [vmem:[#allocation3 + $0x64] ss:$12 sps:$4 sm:$0xff]   ;;  %v456_v15 = vld [vmem:[#allocation3 + $0x68] ss:$12 sps:$4 sm:$0xff]   ;;  %v457_v16 = vld [vmem:[#allocation3 + $0x60] ss:$12 sps:$4 sm:$0xff]  }
  0x18   :  { %v458_v17 = vld [vmem:[#allocation3 + $0x7c] ss:$12 sps:$4 sm:$0xff]   ;;  %v460_v18 = vld [vmem:[#allocation3 + $0x80] ss:$12 sps:$4 sm:$0xff]   ;;  %v461_v19 = vld [vmem:[#allocation3 + $0x78] ss:$12 sps:$4 sm:$0xff]  }
  0x19   :  { %415 = vmatpush3.bf16.msra.mxu1 %v444_v6  ;;  %216 = vmatpush1.bf16.msra.mxu0 %v445_v7  ;;  %v462_v20 = vld [vmem:[#allocation3 + $0x94] ss:$12 sps:$4 sm:$0xff]   ;;  %v464_v21 = vld [vmem:[#allocation3 + $0x98] ss:$12 sps:$4 sm:$0xff]   ;;  %v465_v22 = vld [vmem:[#allocation3 + $0x90] ss:$12 sps:$4 sm:$0xff]  }
  0x1a   :  { %416 = vmatprep.subr.bf16.mxu1 %v498_v0  ;;  %217 = vmatprep.subr.bf16.mxu0 %v446_v8  ;;  %v466_v23 = vld [vmem:[#allocation3 + $0xac] ss:$12 sps:$4 sm:$0xff]   ;;  %v468_v24 = vld [vmem:[#allocation3 + $0xb0] ss:$12 sps:$4 sm:$0xff]   ;;  %v469_v25 = vld [vmem:[#allocation3 + $0xa8] ss:$12 sps:$4 sm:$0xff]  }
  0x1b   :  { %v321_v28 = vshrl.u32 %v320_v27, 7  ;;  %v318_v30 = vld [vmem:[%s553_s2] sm:$0x7] }
  0x1d   :  { %417 = vmatpush3.bf16.msra.mxu1 %v448_v9  ;;  %218 = vmatpush1.bf16.msra.mxu0 %v449_v10  ;;  %v330_v29 = vsub.s32 2, %v321_v28  ;;  %v322_v31 = vsub.s32 0, %v321_v28  ;;  %v326_v32 = vsub.s32 1, %v321_v28 }
  0x1e   :  { %418 = vmatprep.subr.bf16.mxu1 %v498_v0  ;;  %219 = vmatprep.subr.bf16.mxu0 %v450_v11 }
  0x1f   :  { %v331_v33 = vrot.slane %v318_v30, %v330_v29  ;;  %v323_v34 = vrot.slane %v318_v30, %v322_v31  ;;  %v327_v35 = vrot.slane %v318_v30, %v326_v32 }
  0x21   :  { %419 = vmatpush3.bf16.msra.mxu1 %v452_v12  ;;  %220 = vmatpush1.bf16.msra.mxu0 %v453_v13 }
  0x22   :  { %420 = vmatprep.subr.bf16.mxu1 %v498_v0  ;;  %221 = vmatprep.subr.bf16.mxu0 %v454_v14 }
  0x25   :  { %421 = vmatpush3.bf16.msra.mxu1 %v456_v15  ;;  %222 = vmatpush1.bf16.msra.mxu0 %v457_v16 }
  0x26   :  { %422 = vmatprep.subr.bf16.mxu1 %v498_v0  ;;  %223 = vmatprep.subr.bf16.mxu0 %v458_v17 }
  0x29   :  { %423 = vmatpush3.bf16.msra.mxu1 %v460_v18  ;;  %224 = vmatpush1.bf16.msra.mxu0 %v461_v19 }
  0x2a   :  { %424 = vmatprep.subr.bf16.mxu1 %v498_v0  ;;  %225 = vmatprep.subr.bf16.mxu0 %v462_v20 }
  0x2d   :  { %425 = vmatpush3.bf16.msra.mxu1 %v464_v21  ;;  %226 = vmatpush1.bf16.msra.mxu0 %v465_v22 }
  0x2e   :  { %426 = vmatprep.subr.bf16.mxu1 %v498_v0  ;;  %227 = vmatprep.subr.bf16.mxu0 %v466_v23 }
  0x31   :  { %427 = vmatpush3.bf16.msra.mxu1 %v468_v24  ;;  %228 = vmatpush1.bf16.msra.mxu0 %v469_v25 }
  0x34   :  { %429 = vmatmul.mubr.bf16.vlgmr.msra.gmra.mrb[0].mxu1 %v470_v26  ;;  %246 = vmatmul.mubr.bf16.vlgmr.msra.gmra.mrb[0].mxu0 %v470_v26 }
 0x107   :  { %v290_v36 = vpop.f32.mrb[0].mxu1  ;;  %v247_v38 = vpop.f32.mrb[0].mxu0 }
 0x108   :  { %v337_v37 = vadd.f32 %v331_v33, %v290_v36  ;;  %v430_v39 = vpop.f32.mrb[1].mxu1  ;;  %v335_v40 = vadd.f32 %v323_v34, %v247_v38  ;;  %v249_v41 = vpop.f32.mrb[1].mxu0 }
 0x109   :  { %v293_v42 = vpop.f32.mrb[2].mxu1  ;;  %v336_v44 = vadd.f32 %v327_v35, %v249_v41  ;;  %v251_v46 = vpop.f32.mrb[2].mxu0 }
 0x10a   :  { %v400_v43 = vpack.c.bf16 %v337_v37, %v337_v37  ;;  %v340_v45 = vadd.f32 %v331_v33, %v293_v42  ;;  %v431_v47 = vpop.f32.mrb[3].mxu1  ;;  %v338_v48 = vadd.f32 %v323_v34, %v251_v46  ;;  %v253_v49 = vpop.f32.mrb[3].mxu0 }
 0x10b   :  { %v399_v50 = vpack.c.bf16 %v336_v44, %v335_v40  ;;  %v339_v52 = vadd.f32 %v327_v35, %v253_v49 }
 0x10c   :  { %362 = vst [vmem:[%s554_s3 + $0x8] sm:$0xf] %v400_v43  ;;  %v402_v51 = vpack.c.bf16 %v340_v45, %v340_v45 }
 0x10d   :  { %361 = vst [vmem:[%s554_s3] sm:$0xff] %v399_v50  ;;  %v401_v53 = vpack.c.bf16 %v339_v52, %v338_v48 }
 0x10e   :  { %364 = vst [vmem:[%s554_s3 + $0x14] sm:$0xf] %v402_v51 }
 0x10f   :  { %363 = vst [vmem:[%s554_s3 + $0xc] sm:$0xff] %v401_v53 }
 0x110   :  { %369 = vsyncpa [#allocation4], 1 }

// kernel: mha_forward.4
= control target key start
LH: loop header
LB: loop body
LE: loop exit
PB: predicated region body
PF: predicated region fallthrough
CT: control target
= control target key end

     0   :  { %s1037_s12 = smov 0   ;;  %s1039_s13 = smov 0   ;;  %s1159_s0 = inlined_call_operand.vmem [shape: bf16[2,8,384], index: 0, kind: input, shape index: {}, may-alias: {0,1,2}]   ;;  %s1160_s1 = inlined_call_operand.vmem [shape: bf16[2,8,384], index: 1, kind: input, shape index: {}, may-alias: {0,1,2}]   ;;  %s1161_s2 = inlined_call_operand.vmem [shape: bf16[2,8,384], index: 2, kind: input, shape index: {}, may-alias: {0,1,2}]   ;;  %s1162_s3 = inlined_call_operand.vmem [shape: bf16[2,8,128], index: 3, kind: output, shape index: {}]  }
   0x1   :  { %s1041_s14 = smov 0  }
   0x2 LB: > { %s25_s15 = sadd.s32 1, %s1006_s13  ;;  %p849_p0 = scmp.ge.s32.totalorder %s1010_s14, 1  ;;  %s1010_s14 = sphi %s1041_s14, %s13_s14   ;;  %s1006_s13 = sphi %s1039_s13, %s1164_s13   ;;  %s1002_s12 = sphi %s1037_s12, %s1163_s12  }
   0x3   : > { %p27_p1 = scmp.ge.s32.totalorder %s25_s15, 2  ;;  %p179_p2 = scmp.lt.s32.totalorder %s1010_s14, 3 }
   0x5   : > { %s1166_s15 = smov (%p27_p1, %s25_s15), 0  ;;  %p180_p3 = pnand %p849_p0, %p179_p2 }
   0x6   : > { %p221_p4 = scmp.lt.s32.totalorder (!%p180_p3), %s1002_s12, 1  ;;  %v1012_v0 = vmov (!%p180_p3), 0.0   ;;  %vm1013_vm0 = vmmov (!%p180_p3), 0   ;;  %vm253_vm1 = vcmask (!%p180_p3), 261120   ;;  %s1014_s23 = smov (!%p180_p3), 96   ;;  %vm300_vm2 = vcmask (!%p180_p3), 64512  }
   0x7   : > { %183 = sbr.rel (%p180_p3) target bundleno = 1164 (0x48c), region = 32  ;;  %891 = vmatprep.subr.bf16.mxu0 (!%p180_p3), %v1012_v0  ;;  %893 = vmatprep.mubr.msk.bf16.mxu0 (!%p180_p3), %vm1013_vm0, %v1012_v0  ;;  %s1015_s24 = smov (!%p180_p3), 64   ;;  %vm314_vm3 = vcmask (!%p180_p3), 1043456   ;;  %vm361_vm4 = vcmask (!%p180_p3), 257024   ;;  %vm489_vm5 = vcmask (!%p180_p3), 519424   ;;  %vm608_vm6 = vcmask (!%p180_p3), 781824  }
   0x8   : > { %897 = vmatprep.subr.bf16.mxu1 (!%p180_p3), %v1012_v0  ;;  %899 = vmatprep.mubr.msk.bf16.mxu1 (!%p180_p3), %vm1013_vm0, %v1012_v0  ;;  %s1016_s25 = smov (!%p180_p3), 32   ;;  %vm727_vm7 = vcmask (!%p180_p3), 1044224  }
   0xe   : > { %s1168_s12 = smov (!%p221_p4, %s1002_s12), 1 }
   0xf   : > { %s1064_s16 = smul.u32 12, %s1168_s12  ;;  %s853_s29 = sshll.u32 %s1168_s12, 2 }
  0x10   : > { %s1141_s5 = scalar_lea.vmem %s1162_s3, %s853_s29 }
  0x11   : > { %s790_s19 = scalar_lea.vmem %s1160_s1, %s1064_s16  ;;  %s229_s22 = scalar_lea.vmem %s1159_s0, %s1064_s16 }
  0x12   : > { %v854_v1 = vld [vmem:[%s790_s19 + $0x4] sm:$0xf]  ;;  %v250_v3 = vld [vmem:[%s229_s22] sm:$0xf]  ;;  %s794_s28 = scalar_lea.vmem %s1161_s2, %s1064_s16 }
  0x13   : > { %v258_v2 = vsel %vm253_vm1, %v854_v1, 0  ;;  %v858_v4 = vcombine.low %v250_v3, %v250_v3  ;;  %v859_v5 = vcombine.low %v854_v1, %v854_v1  ;;  %v855_v11 = vld [vmem:[%s794_s28 + $0x8] sm:$0xf] }
  0x14   : > { %892 = vmatpush3.bf16.xpose.msra.mxu0 %v258_v2  ;;  %v316_v12 = vsel %vm314_vm3, %v855_v11, 0  ;;  %v861_v41 = vcombine.low %v855_v11, %v855_v11 }
  0x15   : > { %909 = vmatprep.subr.bf16.mxu0 %v1012_v0  ;;  %366 = vrot.lane.b32.xlu1 %v858_v4, %s1014_s23 }
  0x16   : > { %898 = vmatpush3.bf16.msra.mxu1 %v316_v12 }
  0x17   : > { %903 = vmatprep.subr.bf16.mxu1 %v1012_v0 }
  0x19   : > { %493 = vrot.lane.b32.xlu1 %v859_v5, %s1015_s24 }
  0x1b   : > { %894 = vmatmul.mubr.msk.bf16.vlgmr.msra.gmra.mrb[0].mxu0 %vm253_vm1, %v250_v3 }
  0x1c   : > { %911 = vmatprep.mubr.msk.bf16.mxu0 %vm1013_vm0, %v1012_v0 }
  0x1d   : > { %491 = vrot.lane.b32.xlu1 %v858_v4, %s1015_s24 }
  0x21   : > { %612 = vrot.lane.b32.xlu1 %v859_v5, %s1016_s25 }
  0x25   : > { %610 = vrot.lane.b32.xlu1 %v858_v4, %s1016_s25 }
  0x87   : > { %v367_v18 = vpop.permute.xlu1 %366 }
  0x8b   : > { %v494_v21 = vpop.permute.xlu1 %493 }
  0x8c   : > { %v499_v22 = vsel %vm253_vm1, %v494_v21, 0 }
  0x8f   : > { %v492_v23 = vpop.permute.xlu1 %491 }
  0x93   : > { %v613_v24 = vpop.permute.xlu1 %612 }
  0x94   : > { %v618_v25 = vsel %vm253_vm1, %v613_v24, 0 }
  0x97   : > { %v611_v26 = vpop.permute.xlu1 %610 }
  0xee   : > { %v294_v6 = vpop.f32.mrb[0].mxu0 }
  0xef   : > { %v895_v7 = vpop.f32.mrb[1].mxu0  ;;  %v301_v8 = vsel %vm300_vm2, %v294_v6, -inf }
  0xf0   : > { %302 = vmax.xlane.f32.xlu0 %v301_v8  ;;  %v297_v9 = vpop.f32.mrb[2].mxu0 }
  0xf1   : > { %v896_v10 = vpop.f32.mrb[3].mxu0 }
 0x106   : > { %371 = vrot.lane.b32.xlu0 %v859_v5, %s1014_s23 }
 0x17d   : > { %v303_v13 = vpop.xlane.xlu0 %302 }
 0x17e   : > { %v304_v14 = vsub.f32 %v294_v6, %v303_v13 }
 0x180   : > { %v305_v15 = vmul.f32 1.442695, %v304_v14 }
 0x181   : > { %v372_v16 = vpop.permute.xlu0 %371 }
 0x182   : > { %972 = vpow2.f32 %v305_v15  ;;  %v377_v19 = vsel %vm253_vm1, %v372_v16, 0 }
 0x18c   : > { %v1092_v17 = vpop.eup %972 }
 0x18d   : > { %v310_v20 = vpack.c.bf16 %v1092_v17, %v1092_v17  ;;  %v307_v8 = vsel %vm300_vm2, %v1092_v17, 0.0 }
 0x18f   : > { %900 = vmatmul.mubr.msk.bf16.vlgmr.msra.gmra.mrb[0].mxu1 %vm300_vm2, %v310_v20 }
 0x190   : > { %904 = vmatpush3.bf16.xpose.msra.mxu1 %v377_v19  ;;  %905 = vmatprep.mubr.msk.bf16.mxu1 %vm1013_vm0, %v1012_v0 }
 0x191   : > { %915 = vmatprep.subr.bf16.mxu1 %v1012_v0 }
 0x197   : > { %906 = vmatmul.mubr.msk.bf16.vlgmr.msra.gmra.mrb[4].mxu1 %vm253_vm1, %v367_v18 }
 0x198   : > { %916 = vmatpush3.bf16.xpose.msra.mxu1 %v499_v22  ;;  %917 = vmatprep.mubr.msk.bf16.mxu1 %vm1013_vm0, %v1012_v0 }
 0x199   : > { %927 = vmatprep.subr.bf16.mxu1 %v1012_v0 }
 0x19f   : > { %918 = vmatmul.mubr.msk.bf16.vlgmr.msra.gmra.mrb[8].mxu1 %vm253_vm1, %v492_v23 }
 0x1a0   : > { %928 = vmatpush3.bf16.xpose.msra.mxu1 %v618_v25  ;;  %929 = vmatprep.mubr.msk.bf16.mxu1 %vm1013_vm0, %v1012_v0 }
 0x1a7   : > { %930 = vmatmul.mubr.msk.bf16.vlgmr.msra.gmra.mrb[12].mxu1 %vm253_vm1, %v611_v26 }
 0x262   : > { %v1111_v27 = vpop.f32.mrb[0].mxu1 }
 0x263   : > { %v901_v28 = vpop.f32.mrb[1].mxu1 }
 0x264   : > { %v355_v29 = vpop.f32.mrb[2].mxu1 }
 0x265   : > { %v902_v30 = vpop.f32.mrb[3].mxu1 }
 0x26a   : > { %v413_v31 = vpop.f32.mrb[4].mxu1 }
 0x26b   : > { %v907_v32 = vpop.f32.mrb[5].mxu1  ;;  %v419_v33 = vsel %vm300_vm2, %v413_v31, -inf }
 0x26c   : > { %420 = vmax.xlane.f32.xlu1 %v419_v33  ;;  %v416_v34 = vpop.f32.mrb[6].mxu1 }
 0x26d   : > { %v908_v35 = vpop.f32.mrb[7].mxu1 }
 0x272   : > { %v535_v36 = vpop.f32.mrb[8].mxu1 }
 0x273   : > { %v541_v37 = vsel %vm300_vm2, %v535_v36, -inf  ;;  %v919_v38 = vpop.f32.mrb[9].mxu1 }
 0x274   : > { %542 = vmax.xlane.f32.xlu0 %v541_v37  ;;  %v538_v39 = vpop.f32.mrb[10].mxu1 }
 0x275   : > { %v920_v40 = vpop.f32.mrb[11].mxu1 }
 0x27a   : > { %v654_v42 = vpop.f32.mrb[12].mxu1 }
 0x27b   : > { %v931_v43 = vpop.f32.mrb[13].mxu1  ;;  %v660_v46 = vsel %vm300_vm2, %v654_v42, -inf }
 0x27c   : > { %v657_v44 = vpop.f32.mrb[14].mxu1 }
 0x27d   : > { %551 = vrot.lane.b32.xlu1 %v861_v41, %s1015_s24  ;;  %v932_v45 = vpop.f32.mrb[15].mxu1 }
 0x28a   : > { %432 = vrot.lane.b32.xlu0 %v861_v41, %s1014_s23 }
 0x2a1   : > { %661 = vmax.xlane.f32.xlu1 %v660_v46 }
 0x2b2   : > { %670 = vrot.lane.b32.xlu1 %v861_v41, %s1016_s25 }
 0x2f9   : > { %v421_v47 = vpop.xlane.xlu1 %420 }
 0x2fa   : > { %v422_v48 = vsub.f32 %v413_v31, %v421_v47 }
 0x2fc   : > { %v423_v49 = vmul.f32 1.442695, %v422_v48 }
 0x2fd   : > { %v552_v56 = vpop.permute.xlu1 %551 }
 0x2fe   : > { %974 = vpow2.f32 %v423_v49  ;;  %v557_v59 = vsel %vm314_vm3, %v552_v56, 0 }
 0x301   : > { %v543_v50 = vpop.xlane.xlu0 %542 }
 0x302   : > { %v544_v51 = vsub.f32 %v535_v36, %v543_v50 }
 0x304   : > { %v545_v52 = vmul.f32 1.442695, %v544_v51 }
 0x305   : > { %v433_v53 = vpop.permute.xlu0 %432 }
 0x306   : > { %976 = vpow2.f32 %v545_v52  ;;  %v438_v54 = vsel %vm314_vm3, %v433_v53, 0 }
 0x307   : > { %910 = vmatpush3.bf16.msra.mxu0 %v438_v54 }
 0x308   : > { %v975_v55 = vpop.eup %974  ;;  %921 = vmatprep.subr.bf16.mxu0 %v1012_v0 }
 0x309   : > { %v425_v57 = vsel %vm300_vm2, %v975_v55, 0.0  ;;  %v428_v58 = vpack.c.bf16 %v975_v55, %v975_v55 }
 0x30a   : > { %426 = vadd.xlane.f32.xlu0 %v425_v57 }
 0x30b   : > { %912 = vmatmul.mubr.msk.bf16.vlgmr.msra.gmra.mrb[4].mxu0 %vm300_vm2, %v428_v58 }
 0x30c   : > { %922 = vmatpush3.bf16.msra.mxu0 %v557_v59  ;;  %923 = vmatprep.mubr.msk.bf16.mxu0 %vm1013_vm0, %v1012_v0 }
 0x30d   : > { %933 = vmatprep.subr.bf16.mxu0 %v1012_v0 }
 0x310   : > { %v977_v60 = vpop.eup %976 }
 0x311   : > { %v547_v61 = vsel %vm300_vm2, %v977_v60, 0.0  ;;  %v550_v62 = vpack.c.bf16 %v977_v60, %v977_v60 }
 0x312   : > { %548 = vadd.xlane.f32.xlu1 %v547_v61 }
 0x313   : > { %924 = vmatmul.mubr.msk.bf16.vlgmr.msra.gmra.mrb[8].mxu0 %vm300_vm2, %v550_v62 }
 0x314   : > { %935 = vmatprep.mubr.msk.bf16.mxu0 %vm1013_vm0, %v1012_v0 }
 0x32e   : > { %v662_v63 = vpop.xlane.xlu1 %661 }
 0x32f   : > { %v663_v1 = vsub.f32 %v654_v42, %v662_v63 }
 0x331   : > { %v664_v2 = vmul.f32 1.442695, %v663_v1 }
 0x332   : > { %v671_v3 = vpop.permute.xlu1 %670 }
 0x333   : > { %978 = vpow2.f32 %v664_v2  ;;  %v676_v4 = vsel %vm314_vm3, %v671_v3, 0 }
 0x334   : > { %934 = vmatpush3.bf16.msra.mxu0 %v676_v4 }
 0x33d   : > { %v979_v5 = vpop.eup %978 }
 0x33e   : > { %v666_v6 = vsel %vm300_vm2, %v979_v5, 0.0  ;;  %v669_v7 = vpack.c.bf16 %v979_v5, %v979_v5 }
 0x33f   : > { %667 = vadd.xlane.f32.xlu0 %v666_v6 }
 0x340   : > { %936 = vmatmul.mubr.msk.bf16.vlgmr.msra.gmra.mrb[12].mxu0 %vm300_vm2, %v669_v7 }
 0x343   : > { %308 = vadd.xlane.f32.xlu0 %v307_v8 }
 0x397   : > { %v427_v0 = vpop.xlane.xlu0 %426 }
 0x39f   : > { %v549_v11 = vpop.xlane.xlu1 %548 }
 0x3cc   : > { %v668_v9 = vpop.xlane.xlu0 %667 }
 0x3d0   : > { %v309_v10 = vpop.xlane.xlu0 %308 }
 0x3d1   : > { %980 = vrcp.f32 %v309_v10 }
 0x3d2   : > { %982 = vrcp.f32 %v427_v0 }
 0x3d3   : > { %984 = vrcp.f32 %v549_v11 }
 0x3d4   : > { %986 = vrcp.f32 %v668_v9 }
 0x3db   : > { %v981_v12 = vpop.eup %980 }
 0x3dc   : > { %v359_v13 = vmul.f32 %v981_v12, %v1111_v27  ;;  %v983_v14 = vpop.eup %982 }
 0x3dd   : > { %v985_v22 = vpop.eup %984 }
 0x3de   : > { %v474_v15 = vpop.f32.mrb[4].mxu0  ;;  %v360_v16 = vpack.c.bf16 %v359_v13, %v359_v13  ;;  %v987_v29 = vpop.eup %986 }
 0x3df   : > { %v481_v17 = vmul.f32 %v983_v14, %v474_v15  ;;  %v913_v18 = vpop.f32.mrb[5].mxu0 }
 0x3e0   : > { %v477_v19 = vpop.f32.mrb[6].mxu0  ;;  %362 = vst.msk [vmem:[%s1141_s5] sm:$0xf] %vm361_vm4, %v360_v16 }
 0x3e1   : > { %v872_v20 = vpack.c.bf16 %v481_v17, %v481_v17  ;;  %v914_v21 = vpop.f32.mrb[7].mxu0 }
 0x3e3   : > { %486 = vrot.lane.b32.xlu1 %v872_v20, %s1016_s25 }
 0x3e6   : > { %v593_v23 = vpop.f32.mrb[8].mxu0 }
 0x3e7   : > { %v600_v24 = vmul.f32 %v985_v22, %v593_v23  ;;  %v925_v25 = vpop.f32.mrb[9].mxu0 }
 0x3e8   : > { %v596_v26 = vpop.f32.mrb[10].mxu0 }
 0x3e9   : > { %v873_v27 = vpack.c.bf16 %v600_v24, %v600_v24  ;;  %v926_v28 = vpop.f32.mrb[11].mxu0 }
 0x3eb   : > { %605 = vrot.lane.b32.xlu0 %v873_v27, %s1015_s24 }
 0x413   : > { %v712_v30 = vpop.f32.mrb[12].mxu0 }
 0x414   : > { %v719_v31 = vmul.f32 %v987_v29, %v712_v30  ;;  %v937_v32 = vpop.f32.mrb[13].mxu0 }
 0x415   : > { %v715_v33 = vpop.f32.mrb[14].mxu0 }
 0x416   : > { %v874_v34 = vpack.c.bf16 %v719_v31, %v719_v31  ;;  %v938_v35 = vpop.f32.mrb[15].mxu0 }
 0x418   : > { %724 = vrot.lane.b32.xlu1 %v874_v34, %s1014_s23 }
 0x455   : > { %v487_v36 = vpop.permute.xlu1 %486 }
 0x456   : > { %490 = vst.msk [vmem:[%s1141_s5] sm:$0xf] %vm489_vm5, %v487_v36 }
 0x45d   : > { %v606_v37 = vpop.permute.xlu0 %605 }
 0x45e   : > { %609 = vst.msk [vmem:[%s1141_s5] sm:$0xf] %vm608_vm6, %v606_v37 }
 0x48a   : > { %v725_v38 = vpop.permute.xlu1 %724 }
 0x48b   : > { %728 = vst.msk [vmem:[%s1141_s5] sm:$0xf] %vm727_vm7, %v725_v38 }
 0x48c PF: > { %s13_s14 = sadd.s32 1, %s1010_s14   ;;  %s1163_s12 = smov %s1006_s13 }
 0x48d   : > { %p10_p5 = scmp.ge.s32.totalorder %s13_s14, 4   ;;  %s1164_s13 = smov %s1166_s15 }
 0x48f   :  { %12 = sbr.rel (!%p10_p5) target bundleno = 2 (0x2), region = 68 }

</bundles_post_ra>
